<compile_context>
chip_gen: v5e
topology: v5e:2x2
jax: 0.10.0
libtpu: 0.0.40
codegen_flags: <defaults>
</compile_context>

<pallas_src>
import functools

import jax
import jax.numpy as jnp
from jax.experimental import pallas as pl
from jax.experimental.pallas import tpu as pltpu


def _round_up(x, m):
    return ((x + m - 1) // m) * m


def _mlp_critic_kernel(x_ref, w1_ref, b1_ref, w2_ref, b2_ref, w3_ref, b3_ref,
                       o_ref, *, act0, act1):
    # x_ref:  [TB, obs_dim]           (batch on the sublane axis)
    # w1_ref: [obs_dim, H1], b1_ref: [1, H1]
    # w2_ref: [H1, H2],      b2_ref: [1, H2]
    # w3_ref: [1, H2],       b3_ref: [1]   (scalar in SMEM)
    # o_ref:  [TB, 1]
    x = x_ref[...]
    h = act0(jnp.dot(x, w1_ref[...], preferred_element_type=jnp.float32)
             + b1_ref[...])
    h = act1(jnp.dot(h, w2_ref[...], preferred_element_type=jnp.float32)
             + b2_ref[...])
    # Final Linear(H2 -> 1): VPU multiply + lane reduction (XLU), scalar bias
    # from SMEM.  Avoids an N=1 MXU matmul.
    v = jnp.sum(h * w3_ref[...], axis=-1, keepdims=True) + b3_ref[0]
    o_ref[...] = v.astype(o_ref.dtype)


def _vmem_estimate_bytes(tb, obs_dim, h1, h2):
    # 2x: double-buffered obs tile and [TB,1] output tile; fp32 intermediates;
    # 2x on the (tiny) resident weights/biases for their default double-buffer.
    return 4 * (
        2 * tb * obs_dim          # obs tile (double-buffered)
        + tb * (h1 + h2)          # fp32 hidden intermediates
        + 2 * tb                  # output tile (double-buffered)
        + 2 * (obs_dim * h1 + h1 + h1 * h2 + h2 + h2)  # weights / biases
    )


def _pick_batch_tile(B, obs_dim, h1, h2, block_b):
    """Batch tile: multiple of 8 sublanes (or B itself when B < 8), sized so
    the double-buffered working set stays well inside the scoped VMEM budget."""
    if B < 8:
        return B
    tb = min(_round_up(block_b, 8), _round_up(B, 8))
    # Keep comfortably under the v7x/v6e scoped default (~32 MiB).
    while tb > 128 and _vmem_estimate_bytes(tb, obs_dim, h1, h2) > 24 * 1024 * 1024:
        tb //= 2
        tb = _round_up(tb, 8)
    return tb


def mlp_critic_forward(obs, params, *, activations=(jnp.tanh, jnp.tanh),
                       block_b=1024):
    """obs: [B, obs_dim] float32 -> [B] float32 value estimates.

    `params` are PyTorch-native: (w1 [h1,obs_dim], b1 [h1], w2 [h2,h1], b2 [h2],
    w3 [1,h2], b3 [1]).  `activations` are the two hidden-layer activations
    (trace-time callables), matching MLPCritic's per-layer activation list.
    """
    w1, b1, w2, b2, w3, b3 = params
    B, obs_dim = obs.shape
    h1 = w1.shape[0]
    h2 = w2.shape[0]

    tb = _pick_batch_tile(B, obs_dim, h1, h2, block_b)
    grid = (pl.cdiv(B, tb),)

    # Layout plumbing on the kilobyte-sized weights only (x @ W^T orientation);
    # obs itself is passed through untouched.
    w1t = w1.T                    # [obs_dim, h1]
    b1r = b1.reshape(1, h1)
    w2t = w2.T                    # [h1, h2]
    b2r = b2.reshape(1, h2)
    w3r = w3.reshape(1, h2)
    b3s = b3.reshape(1)           # scalar bias -> SMEM

    weight_bytes = 4 * (obs_dim * h1 + h1 + h1 * h2 + h2 + h2 + 1)
    flops = 2 * B * (obs_dim * h1 + h1 * h2 + h2)
    transcendentals = B * (h1 + h2)  # assumes transcendental activations (tanh)
    bytes_accessed = 4 * (B * obs_dim + B) + weight_bytes

    vmem_limit = int(min(64 * 1024 * 1024,
                         max(32 * 1024 * 1024,
                             2 * _vmem_estimate_bytes(tb, obs_dim, h1, h2))))

    kernel = functools.partial(_mlp_critic_kernel,
                               act0=activations[0], act1=activations[1])

    out = pl.pallas_call(
        kernel,
        out_shape=jax.ShapeDtypeStruct((B, 1), jnp.float32),
        grid=grid,
        in_specs=[
            # obs streamed tile-by-tile along the batch (sublane) axis.
            pl.BlockSpec((tb, obs_dim), lambda i: (i, 0)),
            # Weights / biases: whole-array blocks, resident across grid steps.
            pl.BlockSpec((obs_dim, h1), lambda i: (0, 0)),
            pl.BlockSpec((1, h1), lambda i: (0, 0)),
            pl.BlockSpec((h1, h2), lambda i: (0, 0)),
            pl.BlockSpec((1, h2), lambda i: (0, 0)),
            pl.BlockSpec((1, h2), lambda i: (0, 0)),
            # Output-layer bias: scalar in SMEM.
            pl.BlockSpec(memory_space=pltpu.SMEM),
        ],
        out_specs=pl.BlockSpec((tb, 1), lambda i: (i, 0)),
        compiler_params=pltpu.CompilerParams(
            dimension_semantics=("parallel",),
            vmem_limit_bytes=vmem_limit,
        ),
        cost_estimate=pl.CostEstimate(
            flops=int(flops),
            transcendentals=int(transcendentals),
            bytes_accessed=int(bytes_accessed),
        ),
    )(obs, w1t, b1r, w2t, b2r, w3r, b3s)

    # torch.squeeze(v, -1): drop the singleton value dim.
    return out[:, 0]


def init_params(key, obs_dim, hidden_sizes):
    """PyTorch-nn.Linear-style init; native layout: weights [out, in], biases [out]."""
    sizes = [obs_dim] + list(hidden_sizes) + [1]
    params = []
    for j in range(len(sizes) - 1):
        key, kw, kb = jax.random.split(key, 3)
        fan_in, fan_out = sizes[j], sizes[j + 1]
        bound = float(fan_in) ** -0.5
        w = jax.random.uniform(kw, (fan_out, fan_in), jnp.float32, -bound, bound)
        b = jax.random.uniform(kb, (fan_out,), jnp.float32, -bound, bound)
        params += [w, b]
    return tuple(params)


def _reference(obs, params, activations=(jnp.tanh, jnp.tanh)):
    """Plain-JAX reference of the same forward pass."""
    w1, b1, w2, b2, w3, b3 = params
    h = activations[0](obs @ w1.T + b1)
    h = activations[1](h @ w2.T + b2)
    v = h @ w3.T + b3            # [B, 1]
    return jnp.squeeze(v, axis=-1)


if __name__ == "__main__":
    key = jax.random.PRNGKey(0)
    obs_dim = 16
    hidden_sizes = (32, 32)
    batch = 8

    key, k_obs, k_params = jax.random.split(key, 3)
    obs = jax.random.normal(k_obs, (batch, obs_dim), dtype=jnp.float32)
    params = init_params(k_params, obs_dim, hidden_sizes)

    v = mlp_critic_forward(obs, params)
    v = jax.block_until_ready(v)

    v_ref = _reference(obs, params)
    assert v.shape == (batch,), f"expected shape ({batch},), got {v.shape}"
    assert jnp.allclose(v, v_ref, atol=1e-5, rtol=1e-5), "mismatch vs reference"

    print("KERNEL_OK")
</pallas_src>

<mosaic_0001>
module attributes {stable_mosaic.version = 11 : i64} {
  func.func @_mlp_critic_kernel(%arg0: i32, %arg1: memref<8x16xf32, #tpu.memory_space<vmem>>, %arg2: memref<16x32xf32, #tpu.memory_space<vmem>>, %arg3: memref<1x32xf32, #tpu.memory_space<vmem>>, %arg4: memref<32x32xf32, #tpu.memory_space<vmem>>, %arg5: memref<1x32xf32, #tpu.memory_space<vmem>>, %arg6: memref<1x32xf32, #tpu.memory_space<vmem>>, %arg7: memref<1xf32, #tpu.memory_space<smem>>, %arg8: memref<8x1xf32, #tpu.memory_space<vmem>>) attributes {dimension_semantics = [#tpu.dimension_semantics<parallel>], iteration_bounds = array<i64: 1>, scalar_prefetch = 0 : i64, scratch_operands = 0 : i64, tpu.core_type = #tpu.core_type<tc>, window_params = [{transform_indices = @transform_0, window_bounds = array<i64: 8, 16>}, {pipeline_mode = #tpu.pipeline_mode<synchronous>, transform_indices = @transform_1, window_bounds = array<i64: 16, 32>}, {pipeline_mode = #tpu.pipeline_mode<synchronous>, transform_indices = @transform_2, window_bounds = array<i64: 1, 32>}, {pipeline_mode = #tpu.pipeline_mode<synchronous>, transform_indices = @transform_3, window_bounds = array<i64: 32, 32>}, {pipeline_mode = #tpu.pipeline_mode<synchronous>, transform_indices = @transform_4, window_bounds = array<i64: 1, 32>}, {pipeline_mode = #tpu.pipeline_mode<synchronous>, transform_indices = @transform_5, window_bounds = array<i64: 1, 32>}, {transform_indices = @transform_6, window_bounds = array<i64: 1>}, {transform_indices = @transform_7, window_bounds = array<i64: 8, 1>}]} {
    %c0 = arith.constant 0 : index
    %c0_0 = arith.constant 0 : index
    %0 = vector.load %arg1[%c0, %c0_0] : memref<8x16xf32, #tpu.memory_space<vmem>>, vector<8x16xf32>
    %c0_1 = arith.constant 0 : index
    %c0_2 = arith.constant 0 : index
    %1 = vector.load %arg2[%c0_1, %c0_2] : memref<16x32xf32, #tpu.memory_space<vmem>>, vector<16x32xf32>
    %cst = arith.constant dense<0.000000e+00> : vector<8x32xf32>
    %2 = tpu.matmul %0, %1, %cst {dimension_numbers = #tpu.dot_dimension_numbers<[1], [0], [0], [1], [0, 0, 1, 1], [], []>} : vector<8x16xf32>, vector<16x32xf32>, vector<8x32xf32> -> vector<8x32xf32>
    %c0_3 = arith.constant 0 : index
    %c0_4 = arith.constant 0 : index
    %3 = vector.load %arg3[%c0_3, %c0_4] : memref<1x32xf32, #tpu.memory_space<vmem>>, vector<1x32xf32>
    %4 = vector.broadcast %3 : vector<1x32xf32> to vector<8x32xf32>
    %5 = arith.addf %2, %4 : vector<8x32xf32>
    %6 = math.tanh %5 : vector<8x32xf32>
    %c0_5 = arith.constant 0 : index
    %c0_6 = arith.constant 0 : index
    %7 = vector.load %arg4[%c0_5, %c0_6] : memref<32x32xf32, #tpu.memory_space<vmem>>, vector<32x32xf32>
    %cst_7 = arith.constant dense<0.000000e+00> : vector<8x32xf32>
    %8 = tpu.matmul %6, %7, %cst_7 {dimension_numbers = #tpu.dot_dimension_numbers<[1], [0], [0], [1], [0, 0, 1, 1], [], []>} : vector<8x32xf32>, vector<32x32xf32>, vector<8x32xf32> -> vector<8x32xf32>
    %c0_8 = arith.constant 0 : index
    %c0_9 = arith.constant 0 : index
    %9 = vector.load %arg5[%c0_8, %c0_9] : memref<1x32xf32, #tpu.memory_space<vmem>>, vector<1x32xf32>
    %10 = vector.broadcast %9 : vector<1x32xf32> to vector<8x32xf32>
    %11 = arith.addf %8, %10 : vector<8x32xf32>
    %12 = math.tanh %11 : vector<8x32xf32>
    %c0_10 = arith.constant 0 : index
    %c0_11 = arith.constant 0 : index
    %13 = vector.load %arg6[%c0_10, %c0_11] : memref<1x32xf32, #tpu.memory_space<vmem>>, vector<1x32xf32>
    %14 = vector.broadcast %13 : vector<1x32xf32> to vector<8x32xf32>
    %15 = arith.mulf %12, %14 : vector<8x32xf32>
    %cst_12 = arith.constant dense<0.000000e+00> : vector<8xf32>
    %16 = vector.multi_reduction <add>, %15, %cst_12 [1] : vector<8x32xf32> to vector<8xf32>
    %17 = vector.shape_cast %16 : vector<8xf32> to vector<8x1xf32>
    %c0_13 = arith.constant 0 : index
    %18 = memref.load %arg7[%c0_13] : memref<1xf32, #tpu.memory_space<smem>>
    %19 = vector.broadcast %18 : f32 to vector<8x1xf32>
    %20 = arith.addf %17, %19 : vector<8x1xf32>
    %c0_14 = arith.constant 0 : index
    %c0_15 = arith.constant 0 : index
    %21 = vector.load %arg8[%c0_14, %c0_15] : memref<8x1xf32, #tpu.memory_space<vmem>>, vector<8x1xf32>
    tpu.vector_store %arg8[%c0_14, %c0_15], %20 {strides = array<i32>} : memref<8x1xf32, #tpu.memory_space<vmem>>, vector<8x1xf32>,
    return
  }
  func.func @transform_0(%arg0: i32) -> (i32, i32) {
    %c0_i32 = arith.constant 0 : i32
    %c0_i32_0 = arith.constant 0 : i32
    return %arg0, %c0_i32 : i32, i32
  }
  func.func @transform_1(%arg0: i32) -> (i32, i32) {
    %c0_i32 = arith.constant 0 : i32
    %c0_i32_0 = arith.constant 0 : i32
    %c0_i32_1 = arith.constant 0 : i32
    return %c0_i32, %c0_i32_0 : i32, i32
  }
  func.func @transform_2(%arg0: i32) -> (i32, i32) {
    %c0_i32 = arith.constant 0 : i32
    %c0_i32_0 = arith.constant 0 : i32
    %c0_i32_1 = arith.constant 0 : i32
    return %c0_i32, %c0_i32_0 : i32, i32
  }
  func.func @transform_3(%arg0: i32) -> (i32, i32) {
    %c0_i32 = arith.constant 0 : i32
    %c0_i32_0 = arith.constant 0 : i32
    %c0_i32_1 = arith.constant 0 : i32
    return %c0_i32, %c0_i32_0 : i32, i32
  }
  func.func @transform_4(%arg0: i32) -> (i32, i32) {
    %c0_i32 = arith.constant 0 : i32
    %c0_i32_0 = arith.constant 0 : i32
    %c0_i32_1 = arith.constant 0 : i32
    return %c0_i32, %c0_i32_0 : i32, i32
  }
  func.func @transform_5(%arg0: i32) -> (i32, i32) {
    %c0_i32 = arith.constant 0 : i32
    %c0_i32_0 = arith.constant 0 : i32
    %c0_i32_1 = arith.constant 0 : i32
    return %c0_i32, %c0_i32_0 : i32, i32
  }
  func.func @transform_6(%arg0: i32) -> i32 {
    %c0_i32 = arith.constant 0 : i32
    %c0_i32_0 = arith.constant 0 : i32
    return %c0_i32 : i32
  }
  func.func @transform_7(%arg0: i32) -> (i32, i32) {
    %c0_i32 = arith.constant 0 : i32
    %c0_i32_0 = arith.constant 0 : i32
    return %arg0, %c0_i32 : i32, i32
  }
}

</mosaic_0001>

<bundles_post_ra>
// kernel: tpu_custom_call.1
= control target key start
LH: loop header
LB: loop body
LE: loop exit
PB: predicated region body
PF: predicated region fallthrough
CT: control target
= control target key end

     0   :  { %13 = vsyncpa [#allocation4], 0  ;;  %s315_s0 = inlined_call_operand.hbm [shape: f32[8,16], index: 0, kind: input, shape index: {}]   ;;  %s316_s1 = inlined_call_operand.hbm [shape: f32[16,32], index: 1, kind: input, shape index: {}]   ;;  %s317_s2 = inlined_call_operand.vmem [shape: f32[1,32], index: 2, kind: input, shape index: {}]   ;;  %s318_s3 = inlined_call_operand.hbm [shape: f32[32,32], index: 3, kind: input, shape index: {}]   ;;  %s319_s4 = inlined_call_operand.vmem [shape: f32[1,32], index: 4, kind: input, shape index: {}]   ;;  %s320_s5 = inlined_call_operand.vmem [shape: f32[1,32], index: 5, kind: input, shape index: {}]   ;;  %s321_s6 = inlined_call_operand.<no memory space> [shape: f32[1], index: 6, kind: input, shape index: {}]   ;;  %s322_s7 = inlined_call_operand.vmem [shape: f32[8,1], index: 7, kind: output, shape index: {}]  }
   0x1   :  { %14 = vsyncpa [#allocation6], 0  ;;  %s30_s26 = sshll.u32 %s316_s1, 4  ;;  %s246_s27 = smov [#allocation5]   ;;  %s31_s26 = int_to_ptr.hbm [resolvable:$true] %s30_s26 }
   0x2   :  { %s32_s28 = sshll.u32 %s246_s27, 4  ;;  %s20_s8 = sshll.u32 %s315_s0, 4  ;;  %s33_s28 = int_to_ptr.vmem [resolvable:$true] %s32_s28  ;;  %s21_s8 = int_to_ptr.hbm [resolvable:$true] %s20_s8 }
   0x3   :  { %s247_s9 = smov 128   ;;  %s248_s10 = smov 8  }
   0x4   :  { %38 = dma.hbm_to_vmem [thread:$0]  %s31_s26, 256, %s33_s28, [#allocation6], %s247_s9, %s247_s9, %s248_s10  }
   0x5   :  { %s249_s11 = smov [#allocation3]   ;;  %s45_s15 = sshll.u32 %s318_s3, 4  ;;  %s46_s15 = int_to_ptr.hbm [resolvable:$true] %s45_s15 }
   0x6   :  { %s22_s12 = sshll.u32 %s249_s11, 4  ;;  %s250_s1 = smov [#allocation7]   ;;  %s23_s12 = int_to_ptr.vmem [resolvable:$true] %s22_s12 }
   0x7   :  { %25 = dma.hbm_to_vmem [thread:$0]  %s21_s8, 128, %s23_s12, [#allocation4]  }
   0x8   :  { %s47_s16 = sshll.u32 %s250_s1, 4  ;;  %s48_s16 = int_to_ptr.vmem [resolvable:$true] %s47_s16 }
   0x9   :  { %53 = dma.hbm_to_vmem [thread:$0]  %s46_s15, 512, %s48_s16, [#allocation6], %s247_s9, %s247_s9, %s248_s10  }
   0xa   :  { %242 = dma.done.wait [#allocation4], 128  }
   0xb   :  { %243 = vsyncadd [#allocation4], 4294967168 }
   0xc   :  { %244 = dma.done.wait [#allocation6], 768  }
   0xd   :  { %245 = vsyncadd [#allocation6], 4294966528  ;;  %v74_v0 = vld [vmem:[#allocation5 + $0x8] sm:$0xff]  ;;  %v73_v1 = vld [vmem:[#allocation5] sm:$0xff]  ;;  %vm79_vm0 = vcmask 130048   ;;  %vm112_vm1 = vcmask 261120   ;;  %v146_v18 = vstv %s321_s6 }
   0xe   :  { %97 = vmatpush.msra.mxu0 %v74_v0  ;;  %v72_v2 = vld [vmem:[#allocation3] sm:$0xff]  ;;  %v107_v3 = vld [vmem:[#allocation7 + $0x18] sm:$0xff]  ;;  %v106_v4 = vld [vmem:[#allocation7 + $0x10] sm:$0xff]  ;;  %vm148_vm2 = vcmask 7168  }
   0xf   :  { %128 = vmatpush.msra.mxu1 %v107_v3  ;;  %v105_v5 = vld [vmem:[#allocation7 + $0x8] sm:$0xff]  ;;  %v104_v6 = vld [vmem:[#allocation7] sm:$0xff] }
  0x10   :  { %98 = vmatpush.msra.mxu0 %v73_v1  ;;  %v163_v7 = vld [vmem:[%s317_s2] ss:$0 sm:$0xff] }
  0x11   :  { %156 = vmatmul.msk.f32.vlgmr.msra.gmra.mxu0 %vm79_vm0, %v72_v2  ;;  %129 = vmatpush.msra.mxu1 %v106_v4  ;;  %v164_v11 = vld [vmem:[%s319_s4] ss:$0 sm:$0xff] }
  0x12   :  { %v165_v14 = vld [vmem:[%s320_s5] ss:$0 sm:$0xff] }
  0x13   :  { %130 = vmatpush.msra.mxu1 %v105_v5 }
  0x15   :  { %131 = vmatpush.msra.mxu1 %v104_v6 }
  0x8e   :  { %v100_v8 = vpop.f32.mrf.mxu0 }
  0x8f   :  { %v101_v9 = vadd.f32 %v163_v7, %v100_v8 }
  0x91   :  { %166 = vtanh.f32 %v101_v9 }
  0x97   :  { %v167_v10 = vpop.eup %166 }
  0x98   :  { %157 = vmatmul.msk.f32.vlgmr.msra.gmra.mxu1 %vm112_vm1, %v167_v10 }
 0x115   :  { %v133_v12 = vpop.f32.mrf.mxu1 }
 0x116   :  { %v134_v13 = vadd.f32 %v164_v11, %v133_v12 }
 0x118   :  { %168 = vtanh.f32 %v134_v13 }
 0x11e   :  { %v169_v15 = vpop.eup %168 }
 0x11f   :  { %v141_v16 = vmul.f32 %v169_v15, %v165_v14 }
 0x121   :  { %v142_v17 = vsel %vm112_vm1, %v141_v16, 0.0 }
 0x122   :  { %143 = vadd.xlane.f32.xlu0 %v142_v17 }
 0x195   :  { %v144_v19 = vpop.xlane.xlu0 %143 }
 0x196   :  { %v147_v20 = vadd.f32 %v146_v18, %v144_v19 }
 0x198   :  { %149 = vst.msk [vmem:[%s322_s7] sm:$0xff] %vm148_vm2, %v147_v20 }
 0x199   :  { %154 = vsyncpa [#allocation4], 1 }
 0x19a   :  { %155 = vsyncpa [#allocation6], 1 }

</bundles_post_ra>
